<compile_context>
chip_gen: v7x
topology: tpu7x:2x2x1
jax: 0.10.0
libtpu: 0.0.40
codegen_flags: <defaults>
</compile_context>

<pallas_src>
import jax
import jax.numpy as jnp
from jax.experimental import pallas as pl
from jax.experimental.pallas import tpu as pltpu


def _round_up(x, m):
    return (x + m - 1) // m * m


def tree_attn_kernel(ein_ref, bias_ref, wa_ref, ba_ref, ws_ref, out_ref):
    tb, sp = out_ref.shape
    h = wa_ref.shape[1]

    # Attention Linear on the MXU: bf16 operands, f32 accumulation; elementwise stays f32.
    energy = jnp.tanh(
        jnp.dot(ein_ref[...], wa_ref[...], preferred_element_type=jnp.float32)
        + ba_ref[...]
    )                                                      # (tb*sp, h) f32

    # Score head as a lane reduce against the score vector (avoids a (rows,1)-shaped
    # matmul and the (rows,1)->(tb,sp) cross-lane relayout).  sp is a multiple of 8,
    # so the reshape is a free sublane-aligned view.
    energy3 = energy.reshape(tb, sp, h)
    scores = jnp.sum(energy3 * ws_ref[...], axis=-1)       # (tb, sp)

    # bias carries the score-Linear bias plus the additive mask (-1e12), built in XLA.
    scores = scores + bias_ref[...]

    # Numerically-stable softmax over the sequence axis; EXACT divide so rows sum to 1.
    m = jnp.max(scores, axis=-1, keepdims=True)
    p = jnp.exp(scores - m)
    out_ref[...] = p / jnp.sum(p, axis=-1, keepdims=True)


def tree_attn_forward(params, hidden, encoder_outputs, seq_mask=None, target_rows=512):
    """hidden (1,B,H), encoder_outputs (S,B,I), seq_mask (B,S) bool -> (B,1,S)."""
    H = params["hidden_size"]
    I = params["input_size"]
    S, B, _ = encoder_outputs.shape
    F = H + I
    NEG = jnp.float32(-1e12)

    # ---- tile sizing --------------------------------------------------------
    S_pad = _round_up(S, 8)                       # sublane alignment for the in-kernel view
    tile_b = max(1, target_rows // S_pad)
    if tile_b >= B:
        tile_b = B                                # one batch tile: block == full batch dim
        B_pad = B
    else:
        tile_b = max(8, (tile_b // 8) * 8)        # 8-aligned batch tiles when splitting
        B_pad = _round_up(B, tile_b)

    # ---- layout plumbing in XLA (free for the kernel) -----------------------
    hid_rep = jnp.broadcast_to(hidden[0][:, None, :], (B, S, H))   # torch .repeat over S
    enc_bs = jnp.transpose(encoder_outputs, (1, 0, 2))             # (B, S, I)
    feats = jnp.concatenate([hid_rep, enc_bs], axis=-1)            # (B, S, H+I), torch order
    if (B_pad, S_pad) != (B, S):
        feats = jnp.pad(feats, ((0, B_pad - B), (0, S_pad - S), (0, 0)))
    # Batch-major flatten -> kernel emits scores directly in (B, S) layout.
    energy_in = feats.reshape(B_pad * S_pad, F).astype(jnp.bfloat16)

    # Additive bias: score-Linear bias (cancels under softmax, kept for fidelity) plus
    # the mask as an additive -1e12 term; padded rows/cols also get -1e12 (harmless under
    # the max-subtracted softmax, and sliced off afterwards).
    bias = jnp.full((B, S), params["score_b"][0], jnp.float32)
    if seq_mask is not None:
        bias = jnp.where(seq_mask, NEG, bias)
    bias = jnp.pad(bias, ((0, B_pad - B), (0, S_pad - S)), constant_values=NEG)

    attn_w = params["attn_w"].astype(jnp.bfloat16)                  # (F, H) bf16
    attn_b = params["attn_b"]                                       # (1, H) f32
    score_w = params["score_w"]                                     # (1, H) f32

    rows = tile_b * S_pad
    # Double-buffered tiles + resident weights + elementwise intermediates, x2 headroom.
    vmem_needed = (2 * rows * F * 2                    # energy_in tile (bf16)
                   + 2 * 2 * tile_b * S_pad * 4        # bias + out tiles (f32)
                   + 2 * (F * H * 2 + 2 * H * 4)       # weights
                   + 2 * rows * H * 4)                 # tanh activations
    vmem_limit = int(min(max(2 * vmem_needed, 32 * 1024 * 1024), 48 * 1024 * 1024))

    attn = pl.pallas_call(
        tree_attn_kernel,
        grid=(B_pad // tile_b,),
        in_specs=[
            pl.BlockSpec((rows, F), lambda i: (i, 0)),         # energy_in row tile
            pl.BlockSpec((tile_b, S_pad), lambda i: (i, 0)),   # bias tile
            pl.BlockSpec((F, H), lambda i: (0, 0)),            # attn_w (resident)
            pl.BlockSpec((1, H), lambda i: (0, 0)),            # attn_b (resident)
            pl.BlockSpec((1, H), lambda i: (0, 0)),            # score_w (resident)
        ],
        out_specs=pl.BlockSpec((tile_b, S_pad), lambda i: (i, 0)),
        out_shape=jax.ShapeDtypeStruct((B_pad, S_pad), jnp.float32),
        compiler_params=pltpu.CompilerParams(
            dimension_semantics=("parallel",),
            vmem_limit_bytes=vmem_limit,
        ),
    )(energy_in, bias, attn_w, attn_b, score_w)

    return attn[:B, :S][:, None, :]                              # (B, 1, S)


def init_params(key, input_size, hidden_size):
    I, H = input_size, hidden_size
    ks = jax.random.split(key, 4)

    def u(k, shape, scale=0.1):
        return jax.random.uniform(k, shape, jnp.float32, -scale, scale)

    return dict(
        input_size=I, hidden_size=H,
        attn_w=u(ks[0], (H + I, H)),      # == torch attn.weight.T  (y = x @ W + b)
        attn_b=u(ks[1], (1, H)),          # == torch attn.bias
        score_w=u(ks[2], (1, H)),         # == torch score.weight
        score_b=u(ks[3], (1,)),           # == torch score.bias
    )


def reference_forward(params, hidden, encoder_outputs, seq_mask=None):
    # pure-JAX (f32) replication of the PyTorch forward for verification
    H = params["hidden_size"]
    I = params["input_size"]
    S, B, _ = encoder_outputs.shape
    hid_rep = jnp.broadcast_to(hidden[0][None, :, :], (S, B, H))        # .repeat(S,1,1)
    energy_in = jnp.concatenate([hid_rep, encoder_outputs], axis=2).reshape(-1, H + I)
    feat = jnp.tanh(energy_in @ params["attn_w"] + params["attn_b"])    # (S*B, H)
    e = feat @ params["score_w"].T + params["score_b"]                  # (S*B, 1)
    e = e[:, 0].reshape(S, B).T                                         # (B, S)
    if seq_mask is not None:
        e = jnp.where(seq_mask, jnp.float32(-1e12), e)
    attn = jax.nn.softmax(e, axis=1)
    return attn[:, None, :]


if __name__ == "__main__":
    I, H = 32, 32          # encoder-output feature size ("input_size"), hidden size
    B, S = 2, 8            # batch, encoder sequence length

    key = jax.random.PRNGKey(0)
    kp, kh, ke = jax.random.split(key, 3)
    params = init_params(kp, I, H)

    hidden = jax.random.normal(kh, (1, B, H), jnp.float32)
    encoder_outputs = jax.random.normal(ke, (S, B, I), jnp.float32)
    seq_mask = jnp.zeros((B, S), jnp.bool_).at[:, S - 2:].set(True)   # mask last 2 positions

    out = tree_attn_forward(params, hidden, encoder_outputs, seq_mask)
    jax.block_until_ready(out)

    ref = reference_forward(params, hidden, encoder_outputs, seq_mask)
    assert out.shape == (B, 1, S)
    # bf16 matmul operands (f32 accumulation) vs. the pure-f32 reference.
    assert jnp.allclose(out, ref, atol=1e-2, rtol=1e-2), "attention weights mismatch"
    # exact softmax normalization -> rows sum to 1 to f32 precision.
    assert jnp.allclose(out.sum(-1), 1.0, atol=1e-3), "rows do not sum to 1"
    print("KERNEL_OK")
</pallas_src>

<mosaic_0001>
module attributes {stable_mosaic.version = 11 : i64} {
  func.func @tree_attn_kernel(%arg0: i32, %arg1: memref<16x64xbf16, #tpu.memory_space<vmem>>, %arg2: memref<2x8xf32, #tpu.memory_space<vmem>>, %arg3: memref<64x32xbf16, #tpu.memory_space<vmem>>, %arg4: memref<1x32xf32, #tpu.memory_space<vmem>>, %arg5: memref<1x32xf32, #tpu.memory_space<vmem>>, %arg6: memref<2x8xf32, #tpu.memory_space<vmem>>) attributes {dimension_semantics = [#tpu.dimension_semantics<parallel>], iteration_bounds = array<i64: 1>, scalar_prefetch = 0 : i64, scratch_operands = 0 : i64, tpu.core_type = #tpu.core_type<tc>, window_params = [{transform_indices = @transform_0, window_bounds = array<i64: 16, 64>}, {transform_indices = @transform_1, window_bounds = array<i64: 2, 8>}, {pipeline_mode = #tpu.pipeline_mode<synchronous>, transform_indices = @transform_2, window_bounds = array<i64: 64, 32>}, {pipeline_mode = #tpu.pipeline_mode<synchronous>, transform_indices = @transform_3, window_bounds = array<i64: 1, 32>}, {pipeline_mode = #tpu.pipeline_mode<synchronous>, transform_indices = @transform_4, window_bounds = array<i64: 1, 32>}, {transform_indices = @transform_5, window_bounds = array<i64: 2, 8>}]} {
    %c0 = arith.constant 0 : index
    %c0_0 = arith.constant 0 : index
    %0 = vector.load %arg1[%c0, %c0_0] : memref<16x64xbf16, #tpu.memory_space<vmem>>, vector<16x64xbf16>
    %c0_1 = arith.constant 0 : index
    %c0_2 = arith.constant 0 : index
    %1 = vector.load %arg3[%c0_1, %c0_2] : memref<64x32xbf16, #tpu.memory_space<vmem>>, vector<64x32xbf16>
    %cst = arith.constant dense<0.000000e+00> : vector<16x32xf32>
    %2 = tpu.matmul %0, %1, %cst {dimension_numbers = #tpu.dot_dimension_numbers<[1], [0], [0], [1], [0, 0, 1, 1], [], []>} : vector<16x64xbf16>, vector<64x32xbf16>, vector<16x32xf32> -> vector<16x32xf32>
    %c0_3 = arith.constant 0 : index
    %c0_4 = arith.constant 0 : index
    %3 = vector.load %arg4[%c0_3, %c0_4] : memref<1x32xf32, #tpu.memory_space<vmem>>, vector<1x32xf32>
    %4 = vector.broadcast %3 : vector<1x32xf32> to vector<16x32xf32>
    %5 = arith.addf %2, %4 : vector<16x32xf32>
    %6 = math.tanh %5 : vector<16x32xf32>
    %7 = vector.shape_cast %6 : vector<16x32xf32> to vector<2x8x32xf32>
    %c0_5 = arith.constant 0 : index
    %c0_6 = arith.constant 0 : index
    %8 = vector.load %arg5[%c0_5, %c0_6] : memref<1x32xf32, #tpu.memory_space<vmem>>, vector<1x32xf32>
    %9 = vector.shape_cast %8 : vector<1x32xf32> to vector<1x1x32xf32>
    %10 = vector.broadcast %9 : vector<1x1x32xf32> to vector<2x8x32xf32>
    %11 = arith.mulf %7, %10 : vector<2x8x32xf32>
    %cst_7 = arith.constant dense<0.000000e+00> : vector<2x8xf32>
    %12 = vector.multi_reduction <add>, %11, %cst_7 [2] : vector<2x8x32xf32> to vector<2x8xf32>
    %c0_8 = arith.constant 0 : index
    %c0_9 = arith.constant 0 : index
    %13 = vector.load %arg2[%c0_8, %c0_9] : memref<2x8xf32, #tpu.memory_space<vmem>>, vector<2x8xf32>
    %14 = arith.addf %12, %13 : vector<2x8xf32>
    %cst_10 = arith.constant dense<0xFF800000> : vector<2xf32>
    %15 = vector.multi_reduction <maximumf>, %14, %cst_10 [1] : vector<2x8xf32> to vector<2xf32>
    %16 = vector.shape_cast %15 : vector<2xf32> to vector<2x1xf32>
    %17 = vector.broadcast %16 : vector<2x1xf32> to vector<2x8xf32>
    %18 = arith.subf %14, %17 : vector<2x8xf32>
    %19 = math.exp %18 : vector<2x8xf32>
    %cst_11 = arith.constant dense<0.000000e+00> : vector<2xf32>
    %20 = vector.multi_reduction <add>, %19, %cst_11 [1] : vector<2x8xf32> to vector<2xf32>
    %21 = vector.shape_cast %20 : vector<2xf32> to vector<2x1xf32>
    %22 = vector.broadcast %21 : vector<2x1xf32> to vector<2x8xf32>
    %23 = arith.divf %19, %22 : vector<2x8xf32>
    %c0_12 = arith.constant 0 : index
    %c0_13 = arith.constant 0 : index
    %24 = vector.load %arg6[%c0_12, %c0_13] : memref<2x8xf32, #tpu.memory_space<vmem>>, vector<2x8xf32>
    tpu.vector_store %arg6[%c0_12, %c0_13], %23 {strides = array<i32>} : memref<2x8xf32, #tpu.memory_space<vmem>>, vector<2x8xf32>,
    return
  }
  func.func @transform_0(%arg0: i32) -> (i32, i32) {
    %c0_i32 = arith.constant 0 : i32
    %c0_i32_0 = arith.constant 0 : i32
    return %arg0, %c0_i32 : i32, i32
  }
  func.func @transform_1(%arg0: i32) -> (i32, i32) {
    %c0_i32 = arith.constant 0 : i32
    %c0_i32_0 = arith.constant 0 : i32
    return %arg0, %c0_i32 : i32, i32
  }
  func.func @transform_2(%arg0: i32) -> (i32, i32) {
    %c0_i32 = arith.constant 0 : i32
    %c0_i32_0 = arith.constant 0 : i32
    %c0_i32_1 = arith.constant 0 : i32
    return %c0_i32, %c0_i32_0 : i32, i32
  }
  func.func @transform_3(%arg0: i32) -> (i32, i32) {
    %c0_i32 = arith.constant 0 : i32
    %c0_i32_0 = arith.constant 0 : i32
    %c0_i32_1 = arith.constant 0 : i32
    return %c0_i32, %c0_i32_0 : i32, i32
  }
  func.func @transform_4(%arg0: i32) -> (i32, i32) {
    %c0_i32 = arith.constant 0 : i32
    %c0_i32_0 = arith.constant 0 : i32
    %c0_i32_1 = arith.constant 0 : i32
    return %c0_i32, %c0_i32_0 : i32, i32
  }
  func.func @transform_5(%arg0: i32) -> (i32, i32) {
    %c0_i32 = arith.constant 0 : i32
    %c0_i32_0 = arith.constant 0 : i32
    return %arg0, %c0_i32 : i32, i32
  }
}

</mosaic_0001>

<bundles_post_ra>
// kernel: tpu_custom_call.1
= control target key start
LH: loop header
LB: loop body
LE: loop exit
PB: predicated region body
PF: predicated region fallthrough
CT: control target
= control target key end

     0   :  { %v334_v1 = vmov 0.0   ;;  %vm335_vm0 = vmmov 0   ;;  %s428_s0 = inlined_call_operand.vmem [shape: bf16[16,64], index: 0, kind: input, shape index: {}]   ;;  %s429_s1 = inlined_call_operand.vmem [shape: f32[2,8], index: 1, kind: input, shape index: {}]   ;;  %s430_s2 = inlined_call_operand.vmem [shape: bf16[64,32], index: 2, kind: input, shape index: {}]   ;;  %s431_s3 = inlined_call_operand.vmem [shape: f32[1,32], index: 3, kind: input, shape index: {}]   ;;  %s432_s4 = inlined_call_operand.vmem [shape: f32[1,32], index: 4, kind: input, shape index: {}]   ;;  %s433_s5 = inlined_call_operand.hbm [shape: f32[2,8], index: 5, kind: output, shape index: {}]  }
   0x1   :  { %v293_v0 = vld [vmem:[%s430_s2] sm:$0xff]   ;;  %275 = vmatprep.subr.bf16.mxu0 %v334_v1  ;;  %v294_v2 = vld [vmem:[%s430_s2 + $0x8] sm:$0xff]   ;;  %283 = vmatprep.mubr.msk.bf16.mxu0 %vm335_vm0, %v334_v1 }
   0x2   :  { %276 = vmatpush3.bf16.msra.mxu0 %v293_v0 }
   0x3   :  { %277 = vmatprep.subr.bf16.mxu0 %v334_v1 }
   0x4   :  { %10 = vsyncpa [#allocation3], 0  ;;  %v295_v3 = vld [vmem:[%s430_s2 + $0x10] sm:$0xff]   ;;  %v296_v4 = vld [vmem:[%s430_s2 + $0x18] sm:$0xff]   ;;  %vm68_vm1 = vcmask 523264   ;;  %v133_v6 = vlaneseq  ;;  %vm124_vm2 = vcmask 261120  }
   0x5   :  { %v297_v5 = vld [vmem:[%s428_s0] sm:$0xff]   ;;  %v336_v29 = vmov 0   ;;  %vm169_vm3 = vcmask 1041409   ;;  %vm172_vm4 = vcmask 58368  }
   0x6   :  { %278 = vmatpush3.bf16.msra.mxu0 %v294_v2  ;;  %v134_v7 = vshrl.u32 %v133_v6, 7  ;;  %v160_v8 = vand.u32 127, %v133_v6  ;;  %v131_v9 = vld [vmem:[%s429_s1] sm:$0x3]  ;;  %291 = vset.pattern.permute.xlu0 %v336_v29 }
   0x7   :  { %279 = vmatprep.subr.bf16.mxu0 %v334_v1  ;;  %v262_v15 = vld [vmem:[%s431_s3] ss:$0 sm:$0xff]  ;;  %292 = vset.pattern.permute.xlu1 %v336_v29  ;;  %s337_s3 = smov [#allocation2]  }
   0x8   :  { %v386_v10 = vsub.s32 0, %v134_v7  ;;  %v388_v11 = vsub.s32 %v160_v8, %v134_v7  ;;  %v390_v12 = vsub.s32 1, %v134_v7  ;;  %v269_v22 = vld [vmem:[%s432_s4] ss:$0 sm:$0xff]  ;;  %s254_s4 = sshll.u32 %s337_s3, 4  ;;  %s255_s4 = int_to_ptr.vmem [resolvable:$true] %s254_s4 }
   0x9   :  { %s310_s6 = scalar_lea.vmem %s255_s4, 32  ;;  %p315_p1 = scmp.lt.s32.totalorder %s255_s4, %s255_s4 }
   0xa   :  { %280 = vmatpush3.bf16.msra.mxu0 %v295_v3  ;;  %v136_v13 = vrot.slane %v131_v9, %v386_v10  ;;  %v143_v14 = vrot.slane %v131_v9, %v390_v12  ;;  %p311_p0 = scmp.ne.s32.totalorder %s255_s4, %s310_s6  ;;  %p316_p2 = scmp.lt.s32.totalorder %s310_s6, %s310_s6 }
   0xb   :  { %281 = vmatprep.subr.bf16.mxu0 %v334_v1 }
   0xc   :  { %138 = vbcast.lane.b32.xlu1 %v136_v13, 256  ;;  %p317_p3 = por %p316_p2, %p315_p1 }
   0xe   :  { %282 = vmatpush3.bf16.msra.mxu0 %v296_v4  ;;  %p318_p4 = pnand %p317_p3, %p311_p0 }
  0x10   :  { %145 = vbcast.lane.b32.xlu1 %v143_v14, 256 }
  0x11   :  { %284 = vmatmul.mubr.msk.bf16.vlgmr.msra.gmra.mrb[0].mxu0 %vm68_vm1, %v297_v5 }
  0x7e   :  { %v139_v30 = vpop.permute.xlu1 %138 }
  0x82   :  { %v146_v33 = vpop.permute.xlu1 %145 }
  0xe4   :  { %v106_v16 = vpop.f32.mrb[0].mxu0 }
  0xe5   :  { %v107_v17 = vadd.f32 %v262_v15, %v106_v16  ;;  %v285_v18 = vpop.f32.mrb[1].mxu0 }
  0xe6   :  { %v109_v19 = vpop.f32.mrb[2].mxu0 }
  0xe7   :  { %298 = vtanh.f32 %v107_v17  ;;  %v110_v20 = vadd.f32 %v262_v15, %v109_v19  ;;  %v286_v21 = vpop.f32.mrb[3].mxu0 }
  0xe9   :  { %300 = vtanh.f32 %v110_v20 }
  0xf1   :  { %v299_v23 = vpop.eup %298 }
  0xf2   :  { %v122_v24 = vmul.f32 %v299_v23, %v269_v22 }
  0xf3   :  { %v301_v25 = vpop.eup %300 }
  0xf4   :  { %v125_v26 = vsel %vm124_vm2, %v122_v24, 0.0  ;;  %v123_v27 = vmul.f32 %v301_v25, %v269_v22 }
  0xf5   :  { %126 = vadd.xlane.f32.xlu0 %v125_v26 }
  0xf6   :  { %v128_v28 = vsel %vm124_vm2, %v123_v27, 0.0 }
  0xf9   :  { %129 = vadd.xlane.f32.xlu0 %v128_v28 }
 0x182   :  { %v127_v31 = vpop.xlane.xlu0 %126 }
 0x183   :  { %v149_v32 = vadd.f32 %v139_v30, %v127_v31 }
 0x185   :  { %154 = vperm.xlu0 %291, %v149_v32  }
 0x186   :  { %v130_v34 = vpop.xlane.xlu0 %129 }
 0x187   :  { %v150_v35 = vadd.f32 %v146_v33, %v130_v34 }
 0x189   :  { %157 = vperm.xlu1 %292, %v150_v35  }
 0x204   :  { %v155_v36 = vpop.permute.xlu0 %154 }
 0x205   :  { %v164_v38 = vrot.slane %v155_v36, %v388_v11 }
 0x208   :  { %v158_v37 = vpop.permute.xlu1 %157 }
 0x209   :  { %v168_v39 = vrot.slane %v158_v37, %v388_v11 }
 0x20b   :  { %v170_v40 = vsel %vm169_vm3, %v168_v39, %v164_v38 }
 0x20c   :  { %v173_v41 = vsel %vm172_vm4, %v170_v40, -inf }
 0x20d   :  { %174 = vmax.xlane.f32.xlu1 %v173_v41 }
 0x29a   :  { %v175_v42 = vpop.xlane.xlu1 %174 }
 0x29b   :  { %v180_v43 = vrot.slane %v175_v42, %v386_v10  ;;  %v184_v44 = vrot.slane %v175_v42, %v390_v12 }
 0x29d   :  { %v187_v45 = vsub.f32 %v149_v32, %v180_v43  ;;  %v188_v46 = vsub.f32 %v150_v35, %v184_v44 }
 0x29f   :  { %v189_v47 = vmul.f32 1.442695, %v187_v45  ;;  %v191_v48 = vmul.f32 1.442695, %v188_v46 }
 0x2a1   :  { %302 = vpow2.f32 %v189_v47 }
 0x2a2   :  { %304 = vpow2.f32 %v191_v48 }
 0x2ab   :  { %v303_v49 = vpop.eup %302 }
 0x2ac   :  { %v305_v50 = vpop.eup %304  ;;  %196 = vperm.xlu1 %292, %v303_v49  }
 0x2ad   :  { %199 = vperm.xlu0 %291, %v305_v50  }
 0x32b   :  { %v197_v51 = vpop.permute.xlu1 %196 }
 0x32c   :  { %v200_v52 = vpop.permute.xlu0 %199  ;;  %v204_v53 = vrot.slane %v197_v51, %v388_v11 }
 0x32d   :  { %v208_v54 = vrot.slane %v200_v52, %v388_v11 }
 0x32f   :  { %v209_v55 = vsel %vm169_vm3, %v208_v54, %v204_v53 }
 0x330   :  { %v211_v56 = vsel %vm172_vm4, %v209_v55, 0.0 }
 0x331   :  { %212 = vadd.xlane.f32.xlu0 %v211_v56 }
 0x3be   :  { %v213_v57 = vpop.xlane.xlu0 %212 }
 0x3bf   :  { %v218_v58 = vrot.slane %v213_v57, %v386_v10  ;;  %v222_v59 = vrot.slane %v213_v57, %v390_v12 }
 0x3c1   :  { %306 = vrcp.f32 %v218_v58 }
 0x3c2   :  { %308 = vrcp.f32 %v222_v59 }
 0x3cb   :  { %v307_v60 = vpop.eup %306 }
 0x3cc   :  { %v226_v61 = vmul.f32 %v307_v60, %v303_v49  ;;  %v309_v62 = vpop.eup %308 }
 0x3cd   :  { %v228_v63 = vmul.f32 %v309_v62, %v305_v50 }
 0x3ce   :  { %232 = vperm.xlu1 %292, %v226_v61  }
 0x3d2   :  { %235 = vperm.xlu1 %292, %v228_v63  }
 0x44d   :  { %v233_v0 = vpop.permute.xlu1 %232 }
 0x44e   :  { %v240_v2 = vrot.slane %v233_v0, %v388_v11 }
 0x451   :  { %v236_v1 = vpop.permute.xlu1 %235 }
 0x452   :  { %v244_v3 = vrot.slane %v236_v1, %v388_v11 }
 0x454   :  { %v245_v4 = vsel %vm169_vm3, %v244_v3, %v240_v2 }
 0x455   :  { %247 = vst.msk [vmem:[#allocation2] sm:$0x3] %vm172_vm4, %v245_v4 }
 0x456   :  { %321 = shalt.err (!%p318_p4)
}
 0x457   :  { %s322_s9 = scalar_lea.hbm %s433_s5, 32 }
 0x458   :  { %p323_p5 = scmp.ne.s32.totalorder %s433_s5, %s322_s9  ;;  %p326_p6 = scmp.lt.u32.totalorder %s322_s9, %s433_s5 }
 0x45a   :  { %p328_p7 = pnand %p326_p6, %p323_p5 }
 0x45c   :  { %331 = shalt.err (!%p328_p7)
}
 0x45d   :  { %257 = dma.vmem_to_hbm [thread:$0]  %s255_s4, 32, %s433_s5, [#allocation3]  }
 0x45e   :  { %332 = dma.done.wait [#allocation3], 32  }
 0x45f   :  { %333 = vsyncadd [#allocation3], 4294967264 }
 0x460   :  { %261 = vsyncpa [#allocation3], 1 }

</bundles_post_ra>
